<compile_context>
chip_gen: v5e
topology: v5e:2x2
jax: 0.10.0
libtpu: 0.0.40
codegen_flags: <defaults>
</compile_context>

<pallas_src>
import jax
import jax.numpy as jnp
from jax.experimental import pallas as pl
from jax.experimental.pallas import tpu as pltpu

_LN_EPS = 1e-5


def _patch_merging_kernel(x_ref, wa_ref, wb_ref, wsum_ref, b_ref, o_ref):
    """Fused 2x2-merge + LayerNorm(4C) + Linear(4C->2C) on one row tile.

    x_ref:    (1, TH, 2, W2, 2C)  contiguous input rows; hp=0 slab carries
              per-token [x0 | x2], hp=1 slab carries [x1 | x3]
    wa_ref:   (2C, 2C) bf16  gamma-folded weight rows matching the hp=0 slab
    wb_ref:   (2C, 2C) bf16  gamma-folded weight rows matching the hp=1 slab
    wsum_ref: (1, 2C)  f32   column sums of the full folded weight (gamma @ W)
    b_ref:    (1, 2C)  f32   beta @ W
    o_ref:    (1, TH, W2, 2C)
    """
    _, th, _, w2, c2 = x_ref.shape
    tm = th * w2                      # tokens in this tile
    n = 2 * c2                        # merged feature width = 4C

    x = x_ref[...]                    # (1, TH, 2, W2, 2C)
    xa = x[0, :, 0, :, :].reshape(tm, c2)   # even rows: [x0 | x2]
    xb = x[0, :, 1, :, :].reshape(tm, c2)   # odd  rows: [x1 | x3]

    # LayerNorm statistics in f32 (v5e has no bf16 VPU/EUP).
    xa32 = xa.astype(jnp.float32)
    xb32 = xb.astype(jnp.float32)
    s1 = jnp.sum(xa32, axis=-1, keepdims=True) + jnp.sum(xb32, axis=-1, keepdims=True)
    s2 = (jnp.sum(xa32 * xa32, axis=-1, keepdims=True)
          + jnp.sum(xb32 * xb32, axis=-1, keepdims=True))
    mu = s1 / n
    var = jnp.maximum(s2 / n - mu * mu, 0.0)
    r = jax.lax.rsqrt(var + _LN_EPS)          # (tm, 1)

    # m @ W_fold as two bf16 MXU matmuls, f32 accumulation.
    acc = jnp.dot(xa.astype(jnp.bfloat16), wa_ref[...],
                  preferred_element_type=jnp.float32)
    acc = acc + jnp.dot(xb.astype(jnp.bfloat16), wb_ref[...],
                        preferred_element_type=jnp.float32)

    # out = r*(m @ W_fold) - (r*mu)*colsum(W_fold) + beta @ W
    y = acc * r + (b_ref[...] - (r * mu) * wsum_ref[...])
    o_ref[...] = y.reshape(o_ref.shape).astype(o_ref.dtype)


def prepare_patch_merging_params(params):
    """Fold LayerNorm affine into the reduction weight — once, offline.

    Merged channel order (PyTorch concat) is [x0, x1, x2, x3] with
    x0=(h even,w even), x1=(h odd,w even), x2=(h even,w odd), x3=(h odd,w odd).
    The even-row tile carries [x0 | x2] and the odd-row tile [x1 | x3], so the
    gamma-folded weight is split/reordered into the matching row chunks.
    """
    w = params["w_reduction"].astype(jnp.float32)     # (4C, 2C)
    gamma = params["gamma"].astype(jnp.float32)       # (4C,)
    beta = params["beta"].astype(jnp.float32)         # (4C,)
    c4, c2out = w.shape
    c = c4 // 4

    w_fold = gamma[:, None] * w                       # (4C, 2C)
    wa = jnp.concatenate([w_fold[0 * c:1 * c], w_fold[2 * c:3 * c]], axis=0)
    wb = jnp.concatenate([w_fold[1 * c:2 * c], w_fold[3 * c:4 * c]], axis=0)
    wsum = jnp.sum(w_fold, axis=0, keepdims=True)     # (1, 2C) == gamma @ W
    b_fold = (beta @ w).reshape(1, c2out)             # (1, 2C) == beta @ W
    return {
        "wa": wa.astype(jnp.bfloat16),
        "wb": wb.astype(jnp.bfloat16),
        "wsum": wsum.astype(jnp.float32),
        "b_fold": b_fold.astype(jnp.float32),
    }


def patch_merging_forward(x, prepared, H, W, *, target_tokens_per_step=1024):
    """PatchMerging forward. x: (B, H*W, C) -> (B, H/2*W/2, 2C)."""
    B, L, C = x.shape
    assert L == H * W, "input feature has wrong size"
    assert H % 2 == 0 and W % 2 == 0, "H/W must be even"
    H2, W2 = H // 2, W // 2
    c2in = 2 * C      # per-parity-row channel width (the wp pair)
    c2out = 2 * C     # output channels

    # Free reshape (pure dim-split of the contiguous (B, H*W, C) buffer):
    # last dim holds the [w even C | w odd C] pair for each output token.
    xv = x.reshape(B, H2, 2, W2, c2in)

    # Row tile: ~target_tokens_per_step tokens per grid step (amortizes the
    # ~0.35us per-step overhead).  Per-step footprint (input + output blocks,
    # double buffered, plus the 2*(2C,2C) bf16 weights) stays at a few MiB —
    # within the default scoped VMEM of every generation, including v7x.
    th = max(1, min(H2, target_tokens_per_step // max(W2, 1)))
    grid = (B, pl.cdiv(H2, th))

    out = pl.pallas_call(
        _patch_merging_kernel,
        out_shape=jax.ShapeDtypeStruct((B, H2, W2, c2out), x.dtype),
        grid=grid,
        in_specs=[
            pl.BlockSpec((1, th, 2, W2, c2in), lambda b, i: (b, i, 0, 0, 0)),
            pl.BlockSpec((c2in, c2out), lambda b, i: (0, 0)),
            pl.BlockSpec((c2in, c2out), lambda b, i: (0, 0)),
            pl.BlockSpec((1, c2out), lambda b, i: (0, 0)),
            pl.BlockSpec((1, c2out), lambda b, i: (0, 0)),
        ],
        out_specs=pl.BlockSpec((1, th, W2, c2out), lambda b, i: (b, i, 0, 0)),
        compiler_params=pltpu.CompilerParams(
            dimension_semantics=("parallel", "parallel")),
    )(xv, prepared["wa"], prepared["wb"], prepared["wsum"], prepared["b_fold"])

    return out.reshape(B, H2 * W2, c2out)


def patch_merging_reference(x, params, H, W):
    """Pure-JAX f32 reference mirroring the PyTorch module."""
    B, L, C = x.shape
    xr = x.reshape(B, H, W, C)
    x0 = xr[:, 0::2, 0::2, :]
    x1 = xr[:, 1::2, 0::2, :]
    x2 = xr[:, 0::2, 1::2, :]
    x3 = xr[:, 1::2, 1::2, :]
    xm = jnp.concatenate([x0, x1, x2, x3], axis=-1).reshape(B, -1, 4 * C)
    mu = jnp.mean(xm, axis=-1, keepdims=True)
    var = jnp.mean((xm - mu) ** 2, axis=-1, keepdims=True)
    xn = (xm - mu) * jax.lax.rsqrt(var + _LN_EPS)
    xn = xn * params["gamma"] + params["beta"]
    return xn @ params["w_reduction"]


if __name__ == "__main__":
    # PatchMerging(input_resolution=(16, 16), dim=64): 4C = 256, 2C = 128.
    B, H, W, C = 2, 16, 16, 64

    key = jax.random.PRNGKey(0)
    kx, kw, kg, kb = jax.random.split(key, 4)
    x = jax.random.normal(kx, (B, H * W, C), jnp.float32)   # (B, L, C)

    params = {
        # nn.Linear(4C, 2C, bias=False).weight is (2C, 4C); stored transposed.
        "w_reduction": 0.02 * jax.random.normal(kw, (4 * C, 2 * C), jnp.float32),
        "gamma": 1.0 + 0.1 * jax.random.normal(kg, (4 * C,), jnp.float32),
        "beta": 0.1 * jax.random.normal(kb, (4 * C,), jnp.float32),
    }

    prepared = prepare_patch_merging_params(params)   # folded once, offline

    out = patch_merging_forward(x, prepared, H, W)
    out = jax.block_until_ready(out)
    assert out.shape == (B, (H // 2) * (W // 2), 2 * C)

    # Correctness vs. pure-JAX f32 reference (bf16 matmul operands/weights ->
    # loose-but-safe tolerance; this is an explicit precision decision).
    ref = patch_merging_reference(x, params, H, W)
    err = float(jnp.max(jnp.abs(out - ref)))
    assert err < 3e-2, f"max abs err {err}"

    print("KERNEL_OK")
</pallas_src>

<mosaic_0001>
module attributes {stable_mosaic.version = 11 : i64} {
  func.func @_patch_merging_kernel(%arg0: i32, %arg1: i32, %arg2: memref<1x8x2x8x128xf32, #tpu.memory_space<vmem>>, %arg3: memref<128x128xbf16, #tpu.memory_space<vmem>>, %arg4: memref<128x128xbf16, #tpu.memory_space<vmem>>, %arg5: memref<1x128xf32, #tpu.memory_space<vmem>>, %arg6: memref<1x128xf32, #tpu.memory_space<vmem>>, %arg7: memref<1x8x8x128xf32, #tpu.memory_space<vmem>>) attributes {dimension_semantics = [#tpu.dimension_semantics<parallel>, #tpu.dimension_semantics<parallel>], iteration_bounds = array<i64: 2, 1>, scalar_prefetch = 0 : i64, scratch_operands = 0 : i64, tpu.core_type = #tpu.core_type<tc>, window_params = [{transform_indices = @transform_0, window_bounds = array<i64: 1, 8, 2, 8, 128>}, {pipeline_mode = #tpu.pipeline_mode<synchronous>, transform_indices = @transform_1, window_bounds = array<i64: 128, 128>}, {pipeline_mode = #tpu.pipeline_mode<synchronous>, transform_indices = @transform_2, window_bounds = array<i64: 128, 128>}, {pipeline_mode = #tpu.pipeline_mode<synchronous>, transform_indices = @transform_3, window_bounds = array<i64: 1, 128>}, {pipeline_mode = #tpu.pipeline_mode<synchronous>, transform_indices = @transform_4, window_bounds = array<i64: 1, 128>}, {transform_indices = @transform_5, window_bounds = array<i64: 1, 8, 8, 128>}]} {
    %c0 = arith.constant 0 : index
    %c0_0 = arith.constant 0 : index
    %c0_1 = arith.constant 0 : index
    %c0_2 = arith.constant 0 : index
    %c0_3 = arith.constant 0 : index
    %0 = vector.load %arg2[%c0, %c0_0, %c0_1, %c0_2, %c0_3] : memref<1x8x2x8x128xf32, #tpu.memory_space<vmem>>, vector<1x8x2x8x128xf32>
    %1 = vector.extract_strided_slice %0 {offsets = [0, 0, 0, 0, 0], sizes = [1, 8, 1, 8, 128], strides = [1, 1, 1, 1, 1]} : vector<1x8x2x8x128xf32> to vector<1x8x1x8x128xf32>
    %2 = vector.shape_cast %1 : vector<1x8x1x8x128xf32> to vector<8x8x128xf32>
    %3 = vector.shape_cast %2 : vector<8x8x128xf32> to vector<64x128xf32>
    %4 = vector.extract_strided_slice %0 {offsets = [0, 0, 1, 0, 0], sizes = [1, 8, 1, 8, 128], strides = [1, 1, 1, 1, 1]} : vector<1x8x2x8x128xf32> to vector<1x8x1x8x128xf32>
    %5 = vector.shape_cast %4 : vector<1x8x1x8x128xf32> to vector<8x8x128xf32>
    %6 = vector.shape_cast %5 : vector<8x8x128xf32> to vector<64x128xf32>
    %cst = arith.constant dense<0.000000e+00> : vector<64xf32>
    %7 = vector.multi_reduction <add>, %3, %cst [1] : vector<64x128xf32> to vector<64xf32>
    %8 = vector.shape_cast %7 : vector<64xf32> to vector<64x1xf32>
    %cst_4 = arith.constant dense<0.000000e+00> : vector<64xf32>
    %9 = vector.multi_reduction <add>, %6, %cst_4 [1] : vector<64x128xf32> to vector<64xf32>
    %10 = vector.shape_cast %9 : vector<64xf32> to vector<64x1xf32>
    %11 = arith.addf %8, %10 : vector<64x1xf32>
    %12 = arith.mulf %3, %3 : vector<64x128xf32>
    %cst_5 = arith.constant dense<0.000000e+00> : vector<64xf32>
    %13 = vector.multi_reduction <add>, %12, %cst_5 [1] : vector<64x128xf32> to vector<64xf32>
    %14 = vector.shape_cast %13 : vector<64xf32> to vector<64x1xf32>
    %15 = arith.mulf %6, %6 : vector<64x128xf32>
    %cst_6 = arith.constant dense<0.000000e+00> : vector<64xf32>
    %16 = vector.multi_reduction <add>, %15, %cst_6 [1] : vector<64x128xf32> to vector<64xf32>
    %17 = vector.shape_cast %16 : vector<64xf32> to vector<64x1xf32>
    %18 = arith.addf %14, %17 : vector<64x1xf32>
    %cst_7 = arith.constant 2.560000e+02 : f32
    %19 = vector.broadcast %cst_7 : f32 to vector<64x1xf32>
    %20 = arith.divf %11, %19 : vector<64x1xf32>
    %cst_8 = arith.constant 2.560000e+02 : f32
    %21 = vector.broadcast %cst_8 : f32 to vector<64x1xf32>
    %22 = arith.divf %18, %21 : vector<64x1xf32>
    %23 = arith.mulf %20, %20 : vector<64x1xf32>
    %24 = arith.subf %22, %23 : vector<64x1xf32>
    %cst_9 = arith.constant 0.000000e+00 : f32
    %25 = vector.broadcast %cst_9 : f32 to vector<64x1xf32>
    %26 = arith.maximumf %24, %25 : vector<64x1xf32>
    %cst_10 = arith.constant 9.99999974E-6 : f32
    %27 = vector.broadcast %cst_10 : f32 to vector<64x1xf32>
    %28 = arith.addf %26, %27 : vector<64x1xf32>
    %29 = math.rsqrt %28 : vector<64x1xf32>
    %30 = arith.truncf %3 : vector<64x128xf32> to vector<64x128xbf16>
    %c0_11 = arith.constant 0 : index
    %c0_12 = arith.constant 0 : index
    %31 = vector.load %arg3[%c0_11, %c0_12] : memref<128x128xbf16, #tpu.memory_space<vmem>>, vector<128x128xbf16>
    %cst_13 = arith.constant dense<0.000000e+00> : vector<64x128xf32>
    %32 = tpu.matmul %30, %31, %cst_13 {dimension_numbers = #tpu.dot_dimension_numbers<[1], [0], [0], [1], [0, 0, 1, 1], [], []>} : vector<64x128xbf16>, vector<128x128xbf16>, vector<64x128xf32> -> vector<64x128xf32>
    %33 = arith.truncf %6 : vector<64x128xf32> to vector<64x128xbf16>
    %c0_14 = arith.constant 0 : index
    %c0_15 = arith.constant 0 : index
    %34 = vector.load %arg4[%c0_14, %c0_15] : memref<128x128xbf16, #tpu.memory_space<vmem>>, vector<128x128xbf16>
    %cst_16 = arith.constant dense<0.000000e+00> : vector<64x128xf32>
    %35 = tpu.matmul %33, %34, %cst_16 {dimension_numbers = #tpu.dot_dimension_numbers<[1], [0], [0], [1], [0, 0, 1, 1], [], []>} : vector<64x128xbf16>, vector<128x128xbf16>, vector<64x128xf32> -> vector<64x128xf32>
    %36 = arith.addf %32, %35 : vector<64x128xf32>
    %37 = vector.broadcast %29 : vector<64x1xf32> to vector<64x128xf32>
    %38 = arith.mulf %36, %37 : vector<64x128xf32>
    %c0_17 = arith.constant 0 : index
    %c0_18 = arith.constant 0 : index
    %39 = vector.load %arg6[%c0_17, %c0_18] : memref<1x128xf32, #tpu.memory_space<vmem>>, vector<1x128xf32>
    %40 = arith.mulf %29, %20 : vector<64x1xf32>
    %c0_19 = arith.constant 0 : index
    %c0_20 = arith.constant 0 : index
    %41 = vector.load %arg5[%c0_19, %c0_20] : memref<1x128xf32, #tpu.memory_space<vmem>>, vector<1x128xf32>
    %42 = vector.broadcast %40 : vector<64x1xf32> to vector<64x128xf32>
    %43 = vector.broadcast %41 : vector<1x128xf32> to vector<64x128xf32>
    %44 = arith.mulf %42, %43 : vector<64x128xf32>
    %45 = vector.broadcast %39 : vector<1x128xf32> to vector<64x128xf32>
    %46 = arith.subf %45, %44 : vector<64x128xf32>
    %47 = arith.addf %38, %46 : vector<64x128xf32>
    %48 = vector.shape_cast %47 : vector<64x128xf32> to vector<1x8x8x128xf32>
    %c0_21 = arith.constant 0 : index
    %c0_22 = arith.constant 0 : index
    %c0_23 = arith.constant 0 : index
    %c0_24 = arith.constant 0 : index
    %49 = vector.load %arg7[%c0_21, %c0_22, %c0_23, %c0_24] : memref<1x8x8x128xf32, #tpu.memory_space<vmem>>, vector<1x8x8x128xf32>
    tpu.vector_store %arg7[%c0_21, %c0_22, %c0_23, %c0_24], %48 {strides = array<i32>} : memref<1x8x8x128xf32, #tpu.memory_space<vmem>>, vector<1x8x8x128xf32>,
    return
  }
  func.func @transform_0(%arg0: i32, %arg1: i32) -> (i32, i32, i32, i32, i32) {
    %c0_i32 = arith.constant 0 : i32
    %c0_i32_0 = arith.constant 0 : i32
    %c0_i32_1 = arith.constant 0 : i32
    %c0_i32_2 = arith.constant 0 : i32
    return %arg0, %arg1, %c0_i32, %c0_i32_0, %c0_i32_1 : i32, i32, i32, i32, i32
  }
  func.func @transform_1(%arg0: i32, %arg1: i32) -> (i32, i32) {
    %c0_i32 = arith.constant 0 : i32
    %c0_i32_0 = arith.constant 0 : i32
    %c0_i32_1 = arith.constant 0 : i32
    return %c0_i32, %c0_i32_0 : i32, i32
  }
  func.func @transform_2(%arg0: i32, %arg1: i32) -> (i32, i32) {
    %c0_i32 = arith.constant 0 : i32
    %c0_i32_0 = arith.constant 0 : i32
    %c0_i32_1 = arith.constant 0 : i32
    return %c0_i32, %c0_i32_0 : i32, i32
  }
  func.func @transform_3(%arg0: i32, %arg1: i32) -> (i32, i32) {
    %c0_i32 = arith.constant 0 : i32
    %c0_i32_0 = arith.constant 0 : i32
    %c0_i32_1 = arith.constant 0 : i32
    return %c0_i32, %c0_i32_0 : i32, i32
  }
  func.func @transform_4(%arg0: i32, %arg1: i32) -> (i32, i32) {
    %c0_i32 = arith.constant 0 : i32
    %c0_i32_0 = arith.constant 0 : i32
    %c0_i32_1 = arith.constant 0 : i32
    return %c0_i32, %c0_i32_0 : i32, i32
  }
  func.func @transform_5(%arg0: i32, %arg1: i32) -> (i32, i32, i32, i32) {
    %c0_i32 = arith.constant 0 : i32
    %c0_i32_0 = arith.constant 0 : i32
    %c0_i32_1 = arith.constant 0 : i32
    return %arg0, %arg1, %c0_i32, %c0_i32_0 : i32, i32, i32, i32
  }
}

</mosaic_0001>

<bundles_post_ra>
// kernel: tpu_custom_call.1
= control target key start
LH: loop header
LB: loop body
LE: loop exit
PB: predicated region body
PF: predicated region fallthrough
CT: control target
= control target key end

     0   :  { %s1816_s0 = inlined_call_operand.hbm [shape: f32[2,8,2,8,128], index: 0, kind: input, shape index: {}]   ;;  %s1817_s1 = inlined_call_operand.hbm [shape: bf16[128,128], index: 1, kind: input, shape index: {}]   ;;  %s1818_s2 = inlined_call_operand.hbm [shape: bf16[128,128], index: 2, kind: input, shape index: {}]   ;;  %s1819_s3 = inlined_call_operand.vmem [shape: f32[1,128], index: 3, kind: input, shape index: {}]   ;;  %s1820_s4 = inlined_call_operand.vmem [shape: f32[1,128], index: 4, kind: input, shape index: {}]   ;;  %s1821_s5 = inlined_call_operand.hbm [shape: f32[2,8,8,128], index: 5, kind: output, shape index: {}]  }
   0x1   :  { %1823 = sst [smem:[#allocation13_spill]] %s1817_s1 }
   0x2   :  { %1824 = sst [smem:[#allocation14_spill]] %s1818_s2 }
   0x3   :  { %10 = vsyncpa [#allocation3], 0 }
   0x4   :  { %12 = vsyncpa [#allocation3 + $0x1], 0 }
   0x5   :  { %13 = vsyncpa [#allocation6], 0 }
   0x6   :  { %14 = vsyncpa [#allocation4], 0 }
   0x7   :  { %16 = vsyncpa [#allocation4 + $0x1], 0  ;;  %s1364_s18 = smov 0   ;;  %s1366_s19 = smov 0  }
   0x8   :  { %s1368_s20 = smov 0   ;;  %s1370_s21 = smov 0  }
   0x9   :  { %s1372_s22 = smov 0   ;;  %s1374_s23 = smov 0  }
   0xa LB: > { %s920_s24 = sadd.s32 4294967295, %s1323_s23   ;;  %s921_s25 = sadd.s32 4294967294, %s1323_s23   ;;  %s1323_s23 = sphi %s1374_s23, %s22_s23   ;;  %s1319_s22 = sphi %s1372_s22, %s1840_s22   ;;  %s1315_s21 = sphi %s1370_s21, %s1839_s21   ;;  %s1311_s20 = sphi %s1368_s20, %s1838_s20   ;;  %s1307_s19 = sphi %s1366_s19, %s1837_s19   ;;  %s1303_s18 = sphi %s1364_s18, %s1836_s18  }
   0xb   : > { %p56_p0 = scmp.ne.s32.totalorder %s1307_s19, %s1303_s18  ;;  %p1398_p1 = scmp.eq.s32.totalorder %s920_s24, 0 }
   0xc   : > { %p1402_p2 = scmp.eq.s32.totalorder %s920_s24, 1  ;;  %p172_p3 = scmp.eq.s32.totalorder %s921_s25, 1 }
   0xd   : > { %p1408_p4 = por %p1398_p1, %p56_p0  ;;  %p922_p5 = scmp.ge.s32.totalorder %s1323_s23, 1 }
   0xe   : > { %p1413_p6 = por %p172_p3, %p56_p0  ;;  %p179_p7 = scmp.lt.s32.totalorder %s1323_s23, 3 }
   0xf   : > { %s1829_s1 = sld [smem:[#allocation13_spill]]  ;;  %s1325_s9 = smov [#allocation5]  }
  0x10   : > { %p1421_p8 = pnand %p922_p5, %p179_p7  ;;  %s192_s10 = sshll.u32 %s1325_s9, 4  ;;  %s193_s10 = int_to_ptr.vmem [resolvable:$true] %s192_s10 }
  0x11   : > { %p925_p11 = scmp.ge.s32.totalorder %s1323_s23, 2  ;;  %s1831_s2 = sld [smem:[#allocation14_spill]] }
  0x12   : > { %p1049_p9 = pneg %p1421_p8  ;;  %s1326_s14 = smov 64  }
  0x13   : > { %s1327_s15 = smov 4   ;;  %s1328_s16 = smov [#allocation7]  }
  0x14   : > { %p1050_p10 = pnand %p1049_p9, %p1398_p1  ;;  %s206_s17 = sshll.u32 %s1328_s16, 4  ;;  %s207_s17 = int_to_ptr.vmem [resolvable:$true] %s206_s17 }
  0x15   : > { %s190_s7 = sshll.u32 %s1829_s1, 4  ;;  %s34_s24 = sadd.s32 1, %s1319_s22  ;;  %s191_s7 = int_to_ptr.hbm [resolvable:$true] %s190_s7 }
  0x16   : > { %1052 = dma.hbm_to_vmem [thread:$0]  (!%p1050_p10), %s191_s7, 1024, %s193_s10, [#allocation6], %s1326_s14, %s1326_s14, %s1327_s15  }
  0x17   : > { %s204_s13 = sshll.u32 %s1831_s2, 4  ;;  %s43_s25 = sadd.s32 1, %s1311_s20  ;;  %s205_s13 = int_to_ptr.hbm [resolvable:$true] %s204_s13 }
  0x18   : > { %1055 = dma.hbm_to_vmem [thread:$0]  (!%p1050_p10), %s205_s13, 1024, %s207_s17, [#allocation6], %s1326_s14, %s1326_s14, %s1327_s15  }
  0x19   : > { %p36_p12 = scmp.ge.s32.totalorder %s34_s24, 2  ;;  %p50_p13 = scmp.ne.s32.totalorder %s1311_s20, %s1307_s19 }
  0x1a   : > { %p51_p0 = scmp.eq.s32.totalorder %s1323_s23, 0  ;;  %p1066_p3 = scmp.lt.s32.totalorder %s1323_s23, 2 }
  0x1b   : > { %s1842_s24 = smov (%p36_p12, %s34_s24), 0  ;;  %p1447_p7 = por %p1402_p2, %p50_p13 }
  0x1c   : > { %1832 = sst [smem:[#allocation12_spill]] %s1842_s24  ;;  %p1441_p5 = por %p51_p0, %p50_p13 }
  0x1d   : > { %s38_s7 = ssub.s32 %s1319_s22, %s1842_s24  ;;  %s226_s9 = sand.u32 1, %s1311_s20  }
  0x1e   : > { %p41_p9 = scmp.eq.s32.totalorder %s38_s7, 0  ;;  %s926_s10 = sshll.u32 %s226_s9, 7 }
  0x1f   : > { %s1003_s11 = sshll.u32 %s1319_s22, 7  ;;  %s230_s17 = scalar_lea.vmem [#allocation2], %s926_s10 }
  0x20   : > { %s1456_s12 = scalar_select %p41_p9, %s1311_s20, %s43_s25  }
  0x21   : > { %s238_s15 = scalar_lea.hbm %s1816_s0, %s1003_s11  ;;  %s241_s1 = sshll.u32 %s230_s17, 4  ;;  %s242_s1 = int_to_ptr.vmem [resolvable:$true] %s241_s1 }
  0x22   : > { %s239_s16 = sshll.u32 %s238_s15, 4  ;;  %p1057_p2 = pnand %p1066_p3, %p1441_p5  ;;  %s240_s16 = int_to_ptr.hbm [resolvable:$true] %s239_s16 }
  0x23   : > { %s227_s27 = scalar_lea.sflag [#allocation3], %s226_s9  ;;  %s1329_s2 = smov 128  }
  0x24   : > { %s1330_s24 = smov 8   ;;  %253 = sbr.rel (%p1421_p8) target bundleno = 284 (0x11c), region = 40 }
  0x25   : > { %1059 = dma.hbm_to_vmem [thread:$0]  (!%p1057_p2), %s240_s16, 2048, %s242_s1, %s227_s27, %s1329_s2, %s1329_s2, %s1330_s24  }
  0x26   : > { %s1468_s25 = sand.u32 (!%p1421_p8), 1, %s1307_s19  }
  0x27   : > { %s930_s7 = sshll.u32 (!%p1421_p8), %s1468_s25, 7  ;;  %s256_s10 = scalar_lea.sflag (!%p1421_p8), [#allocation3], %s1468_s25 }
  0x28   : > { %s1472_s11 = scalar_lea.vmem (!%p1421_p8), [#allocation2], %s930_s7 }
  0x29   : > { %1290 = dma.done.wait (%p1408_p4), %s256_s10, 2048  }
  0x2a   : > { %1292 = vsyncadd (%p1408_p4), %s256_s10, 4294965248 }
  0x2b   : > { %1294 = dma.done.wait (%p1398_p1), [#allocation6], 2048  }
  0x2c   : > { %1296 = vsyncadd (%p1398_p1), [#allocation6], 4294965248  ;;  %v1483_v0 = vld [vmem:[%s1472_s11 + $0x40] sm:$0xff]  ;;  %v1019_v3 = vld [vmem:[#allocation7 + $0x38] sm:$0xff]  ;;  %s933_s8 = sshll.u32 %s1468_s25, 6  ;;  %s1020_s30 = sshll.u32 %s1315_s21, 6 }
  0x2d   : > { %v1486_v1 = vld [vmem:[%s1472_s11 + $0x20] sm:$0xff]  ;;  %323 = vadd.xlane.f32.xlu2 %v1483_v0  ;;  %v1011_v4 = vld [vmem:[#allocation5 + $0x38] sm:$0xff]  ;;  %v1495_v5 = vld [vmem:[%s1472_s11 + $0x50] sm:$0xff]  ;;  %1021 = vmatpush.bf16.msra.mxu2 %v1019_v3  ;;  %v359_v38 = vmul.f32 %v1483_v0, %v1483_v0  ;;  %s1740_s24 = scalar_lea.vmem [#allocation8], %s933_s8  ;;  %s810_s13 = scalar_lea.hbm %s1821_s5, %s1020_s30 }
  0x2e   : > { %v1489_v2 = vld [vmem:[%s1472_s11] sm:$0xff]  ;;  %319 = vadd.xlane.f32.xlu1 %v1486_v1  ;;  %v1498_v6 = vld [vmem:[%s1472_s11 + $0x30] sm:$0xff]  ;;  %1029 = vmatpush.bf16.msra.mxu3 %v1011_v4  ;;  %v1017_v10 = vld [vmem:[#allocation7 + $0x28] sm:$0xff]  ;;  %v548_v32 = vpack.c.bf16 %v1495_v5, %v1483_v0  ;;  %v357_v40 = vmul.f32 %v1486_v1, %v1486_v1  ;;  %v360_v47 = vmul.f32 %v1495_v5, %v1495_v5  ;;  %s811_s14 = sshll.u32 %s1740_s24, 4  ;;  %s813_s15 = sshll.u32 %s810_s13, 4  ;;  %s812_s14 = int_to_ptr.vmem [resolvable:$true] %s811_s14  ;;  %s814_s15 = int_to_ptr.hbm [resolvable:$true] %s813_s15 }
  0x2f   : > { %315 = vadd.xlane.f32.xlu0 %v1489_v2  ;;  %v1501_v7 = vld [vmem:[%s1472_s11 + $0x10] sm:$0xff]  ;;  %634 = vmatpush.bf16.msra.mxu0 %v1019_v3  ;;  %v1009_v11 = vld [vmem:[#allocation5 + $0x28] sm:$0xff]  ;;  %v1016_v14 = vld [vmem:[#allocation7 + $0x20] sm:$0xff]  ;;  %v355_v36 = vmul.f32 %v1489_v2, %v1489_v2  ;;  %v358_v39 = vmul.f32 %v1498_v6, %v1498_v6  ;;  %v547_v44 = vpack.c.bf16 %v1498_v6, %v1486_v1  ;;  %s797_s16 = scalar_lea.sflag [#allocation4], %s1468_s25  ;;  %s1251_s17 = sshra.s32 %s814_s15, 4  ;;  %s1252_s17 = int_to_ptr.hbm [resolvable:$true] %s1251_s17 }
  0x30   : > { %v1018_v8 = vld [vmem:[#allocation7 + $0x30] sm:$0xff]  ;;  %711 = vmatpush.bf16.msra.mxu1 %v1011_v4  ;;  %v1510_v13 = vld [vmem:[%s1472_s11 + $0x8] sm:$0xff]  ;;  %v1513_v15 = vld [vmem:[%s1472_s11 + $0x60] sm:$0xff]  ;;  %v546_v34 = vpack.c.bf16 %v1501_v7, %v1489_v2  ;;  %v356_v35 = vmul.f32 %v1501_v7, %v1501_v7  ;;  %s1253_s27 = scalar_lea.hbm %s1252_s17, 64  ;;  %p1258_p10 = scmp.lt.s32.totalorder %s1252_s17, %s1821_s5 }
  0x31   : > { %v1010_v9 = vld [vmem:[#allocation5 + $0x30] sm:$0xff]  ;;  %1022 = vmatpush.bf16.msra.mxu2 %v1018_v8  ;;  %v1008_v16 = vld [vmem:[#allocation5 + $0x20] sm:$0xff]  ;;  %v1015_v17 = vld [vmem:[#allocation7 + $0x18] sm:$0xff]  ;;  %v361_v46 = vmul.f32 %v1513_v15, %v1513_v15  ;;  %v379_v50 = vmul.f32 %v1510_v13, %v1510_v13  ;;  %p1254_p1 = scmp.ne.s32.totalorder %s1252_s17, %s1253_s27 }
  0x32   : > { %1030 = vmatpush.bf16.msra.mxu3 %v1010_v9  ;;  %v1507_v12 = vld [vmem:[%s1472_s11 + $0x70] sm:$0xff]  ;;  %v1007_v18 = vld [vmem:[#allocation5 + $0x18] sm:$0xff]  ;;  %v1519_v19 = vld [vmem:[%s1472_s11 + $0x28] sm:$0xff] }
  0x33   : > { %635 = vmatpush.bf16.msra.mxu0 %v1018_v8  ;;  %v1522_v20 = vld [vmem:[%s1472_s11 + $0x38] sm:$0xff]  ;;  %v1014_v21 = vld [vmem:[#allocation7 + $0x10] sm:$0xff]  ;;  %v1013_v24 = vld [vmem:[#allocation7 + $0x8] sm:$0xff]  ;;  %v549_v42 = vpack.c.bf16 %v1507_v12, %v1513_v15  ;;  %v362_v45 = vmul.f32 %v1507_v12, %v1507_v12  ;;  %v381_v48 = vmul.f32 %v1519_v19, %v1519_v19  ;;  %p1255_p4 = pnand %p1254_p1, %p1447_p7 }
  0x34   : > { %712 = vmatpush.bf16.msra.mxu1 %v1010_v9  ;;  %v1525_v22 = vld [vmem:[%s1472_s11 + $0x18] sm:$0xff]  ;;  %v1006_v23 = vld [vmem:[#allocation5 + $0x10] sm:$0xff]  ;;  %v1005_v25 = vld [vmem:[#allocation5 + $0x8] sm:$0xff]  ;;  %v567_v43 = vpack.c.bf16 %v1522_v20, %v1519_v19  ;;  %v382_v53 = vmul.f32 %v1522_v20, %v1522_v20 }
  0x35   : > { %325 = vadd.xlane.f32.xlu2 %v1495_v5  ;;  %1023 = vmatpush.bf16.msra.mxu2 %v1017_v10  ;;  %v310_v26 = vld [vmem:[%s1472_s11 + $0x58] sm:$0xff]  ;;  %v312_v27 = vld [vmem:[%s1472_s11 + $0x68] sm:$0xff]  ;;  %v1012_v28 = vld [vmem:[#allocation7] sm:$0xff]  ;;  %v566_v33 = vpack.c.bf16 %v1525_v22, %v1510_v13  ;;  %v380_v49 = vmul.f32 %v1525_v22, %v1525_v22  ;;  %p1256_p8 = pneg %p1255_p4 }
  0x36   : > { %321 = vadd.xlane.f32.xlu1 %v1498_v6  ;;  %1031 = vmatpush.bf16.msra.mxu3 %v1009_v11  ;;  %v308_v29 = vld [vmem:[%s1472_s11 + $0x48] sm:$0xff]  ;;  %v1004_v30 = vld [vmem:[#allocation5] sm:$0xff]  ;;  %v314_v37 = vld [vmem:[%s1472_s11 + $0x78] sm:$0xff]  ;;  %v384_v51 = vmul.f32 %v310_v26, %v310_v26  ;;  %v385_v55 = vmul.f32 %v312_v27, %v312_v27  ;;  %s1257_s11 = scalar_lea.hbm %s1821_s5, 128 }
  0x37   : > { %317 = vadd.xlane.f32.xlu0 %v1501_v7  ;;  %636 = vmatpush.bf16.msra.mxu0 %v1017_v10  ;;  %v568_v31 = vpack.c.bf16 %v310_v26, %v308_v29  ;;  %v569_v41 = vpack.c.bf16 %v314_v37, %v312_v27  ;;  %v383_v52 = vmul.f32 %v308_v29, %v308_v29  ;;  %v1331_v7 = vmov 256.0   ;;  %p1259_p12 = scmp.lt.s32.totalorder %s1257_s11, %s1253_s27 }
  0x38   : > { %713 = vmatpush.bf16.msra.mxu1 %v1009_v11  ;;  %v386_v54 = vmul.f32 %v314_v37, %v314_v37  ;;  %1129 = vrcp.f32 %v1331_v7 }
  0x39   : > { %1024 = vmatpush.bf16.msra.mxu2 %v1016_v14  ;;  %p1260_p13 = por %p1259_p12, %p1258_p10 }
  0x3a   : > { %1032 = vmatpush.bf16.msra.mxu3 %v1008_v16 }
  0x3b   : > { %637 = vmatpush.bf16.msra.mxu0 %v1016_v14  ;;  %p1261_p0 = pnand %p1260_p13, %p1256_p8 }
  0x3c   : > { %714 = vmatpush.bf16.msra.mxu1 %v1008_v16 }
  0x3d   : > { %331 = vadd.xlane.f32.xlu2 %v1510_v13  ;;  %1025 = vmatpush.bf16.msra.mxu2 %v1015_v17 }
  0x3e   : > { %329 = vadd.xlane.f32.xlu1 %v1507_v12  ;;  %1033 = vmatpush.bf16.msra.mxu3 %v1007_v18  ;;  %v1130_v11 = vpop.eup %1129 }
  0x3f   : > { %327 = vadd.xlane.f32.xlu0 %v1513_v15  ;;  %638 = vmatpush.bf16.msra.mxu0 %v1015_v17  ;;  %v412_v12 = vmul.f32 256.0, %v1130_v11  ;;  %vm416_vm0 = vweird.f32 %v1130_v11 }
  0x40   : > { %715 = vmatpush.bf16.msra.mxu1 %v1007_v18 }
  0x41   : > { %1026 = vmatpush.bf16.msra.mxu2 %v1014_v21  ;;  %v413_v15 = vsub.f32 1.0, %v412_v12 }
  0x42   : > { %1034 = vmatpush.bf16.msra.mxu3 %v1006_v23 }
  0x43   : > { %639 = vmatpush.bf16.msra.mxu0 %v1014_v21  ;;  %v414_v17 = vmul.f32 %v1130_v11, %v413_v15 }
  0x44   : > { %716 = vmatpush.bf16.msra.mxu1 %v1006_v23 }
  0x45   : > { %337 = vadd.xlane.f32.xlu2 %v1522_v20  ;;  %1027 = vmatpush.bf16.msra.mxu2 %v1013_v24  ;;  %v415_v20 = vadd.f32 %v1130_v11, %v414_v17 }
  0x46   : > { %335 = vadd.xlane.f32.xlu1 %v1519_v19  ;;  %1035 = vmatpush.bf16.msra.mxu3 %v1005_v25 }
  0x47   : > { %333 = vadd.xlane.f32.xlu0 %v1525_v22  ;;  %640 = vmatpush.bf16.msra.mxu0 %v1013_v24 }
  0x48   : > { %717 = vmatpush.bf16.msra.mxu1 %v1005_v25  ;;  %v1576_v25 = vsel %vm416_vm0, %v1130_v11, %v415_v20 }
  0x49   : > { %1028 = vmatpush.bf16.msra.mxu2 %v1012_v28 }
  0x4a   : > { %1036 = vmatpush.bf16.msra.mxu3 %v1004_v30 }
  0x4b   : > { %641 = vmatpush.bf16.msra.mxu0 %v1012_v28 }
  0x4c   : > { %718 = vmatpush.bf16.msra.mxu1 %v1004_v30  ;;  %652 = vmatmul.bf16.vlgmr.msra.gmra.mxu2 %v568_v31 }
  0x4d   : > { %343 = vadd.xlane.f32.xlu2 %v312_v27  ;;  %729 = vmatmul.bf16.vlgmr.msra.gmra.mxu3 %v548_v32 }
  0x4e   : > { %341 = vadd.xlane.f32.xlu1 %v310_v26  ;;  %642 = vmatmul.bf16.vlgmr.msra.gmra.mxu0 %v566_v33 }
  0x4f   : > { %339 = vadd.xlane.f32.xlu0 %v308_v29  ;;  %719 = vmatmul.bf16.vlgmr.msra.gmra.mxu1 %v546_v34 }
  0x55   : > { %365 = vadd.xlane.f32.xlu2 %v356_v35 }
  0x56   : > { %363 = vadd.xlane.f32.xlu1 %v355_v36 }
  0x57   : > { %345 = vadd.xlane.f32.xlu0 %v314_v37 }
  0x5c   : > { %657 = vmatmul.bf16.gmra.mxu2 %v569_v41 }
  0x5d   : > { %371 = vadd.xlane.f32.xlu2 %v359_v38  ;;  %734 = vmatmul.bf16.gmra.mxu3 %v549_v42 }
  0x5e   : > { %369 = vadd.xlane.f32.xlu1 %v358_v39  ;;  %647 = vmatmul.bf16.gmra.mxu0 %v567_v43 }
  0x5f   : > { %367 = vadd.xlane.f32.xlu0 %v357_v40  ;;  %724 = vmatmul.bf16.gmra.mxu1 %v547_v44 }
  0x65   : > { %377 = vadd.xlane.f32.xlu2 %v362_v45 }
  0x66   : > { %375 = vadd.xlane.f32.xlu1 %v361_v46 }
  0x67   : > { %373 = vadd.xlane.f32.xlu0 %v360_v47 }
  0x6d   : > { %391 = vadd.xlane.f32.xlu2 %v381_v48 }
  0x6e   : > { %389 = vadd.xlane.f32.xlu1 %v380_v49 }
  0x6f   : > { %387 = vadd.xlane.f32.xlu0 %v379_v50 }
  0x75   : > { %397 = vadd.xlane.f32.xlu2 %v384_v51 }
  0x76   : > { %395 = vadd.xlane.f32.xlu1 %v383_v52 }
  0x77   : > { %393 = vadd.xlane.f32.xlu0 %v382_v53 }
  0x7e   : > { %401 = vadd.xlane.f32.xlu1 %v386_v54 }
  0x7f   : > { %399 = vadd.xlane.f32.xlu0 %v385_v55 }
  0xa0   : > { %v324_v56 = vpop.xlane.xlu2 %323 }
  0xa1   : > { %v320_v57 = vpop.xlane.xlu1 %319 }
  0xa2   : > { %v316_v58 = vpop.xlane.xlu0 %315 }
  0xa8   : > { %v326_v59 = vpop.xlane.xlu2 %325 }
  0xa9   : > { %v322_v60 = vpop.xlane.xlu1 %321 }
  0xaa   : > { %v318_v61 = vpop.xlane.xlu0 %317 }
  0xb0   : > { %v332_v63 = vpop.xlane.xlu2 %331 }
  0xb1   : > { %v1570_v62 = vpop.xlane.xlu1 %329  ;;  %v347_v24 = vadd.f32 %v332_v63, %v316_v58 }
  0xb2   : > { %v328_v0 = vpop.xlane.xlu0 %327 }
  0xb3   : > { %v1589_v30 = vmul.f32 %v1576_v25, %v347_v24 }
  0xb5   : > { %v434_v43 = vmul.f32 %v1589_v30, %v1589_v30 }
  0xb8   : > { %v338_v2 = vpop.xlane.xlu2 %337 }
  0xb9   : > { %v336_v1 = vpop.xlane.xlu1 %335  ;;  %v350_v44 = vadd.f32 %v338_v2, %v322_v60 }
  0xba   : > { %v334_v3 = vpop.xlane.xlu0 %333  ;;  %v349_v22 = vadd.f32 %v336_v1, %v320_v57 }
  0xbb   : > { %v348_v23 = vadd.f32 %v334_v3, %v318_v61  ;;  %v1607_v53 = vmul.f32 %v1576_v25, %v350_v44 }
  0xbc   : > { %v1579_v26 = vmul.f32 %v1576_v25, %v349_v22 }
  0xbd   : > { %v1582_v27 = vmul.f32 %v1576_v25, %v348_v23 }
  0xbe   : > { %v436_v39 = vmul.f32 %v1579_v26, %v1579_v26 }
  0xbf   : > { %v435_v40 = vmul.f32 %v1582_v27, %v1582_v27 }
  0xc0   : > { %v344_v5 = vpop.xlane.xlu2 %343 }
  0xc1   : > { %v342_v4 = vpop.xlane.xlu1 %341  ;;  %v353_v54 = vadd.f32 %v344_v5, %v328_v0 }
  0xc2   : > { %v340_v6 = vpop.xlane.xlu0 %339  ;;  %v352_v36 = vadd.f32 %v342_v4, %v326_v59 }
  0xc3   : > { %v351_v37 = vadd.f32 %v340_v6, %v324_v56 }
  0xc4   : > { %v1601_v48 = vmul.f32 %v1576_v25, %v352_v36 }
  0xc5   : > { %v1604_v49 = vmul.f32 %v1576_v25, %v351_v37 }
  0xc6   : > { %v439_v1 = vmul.f32 %v1601_v48, %v1601_v48 }
  0xc7   : > { %v438_v2 = vmul.f32 %v1604_v49, %v1604_v49 }
  0xc8   : > { %v366_v8 = vpop.xlane.xlu2 %365 }
  0xc9   : > { %v364_v9 = vpop.xlane.xlu1 %363 }
  0xca   : > { %v346_v10 = vpop.xlane.xlu0 %345 }
  0xcb   : > { %v1584_v28 = vpop.f32.mrf.mxu0  ;;  %v354_v6 = vadd.f32 %v346_v10, %v1570_v62  ;;  %v1629_v62 = vmul.f32 %v1576_v25, %v353_v54 }
  0xcc   : > { %v1586_v29 = vpop.f32.mrf.mxu1 }
  0xcd   : > { %v1632_v10 = vmul.f32 %v1576_v25, %v354_v6 }
  0xd0   : > { %v372_v13 = vpop.xlane.xlu2 %371  ;;  %v730_v36 = vpop.f32.mrf.mxu3 }
  0xd1   : > { %v370_v14 = vpop.xlane.xlu1 %369 }
  0xd2   : > { %v368_v16 = vpop.xlane.xlu0 %367 }
  0xd3   : > { %v645_v0 = vpop.f32.mrf.mxu0 }
  0xd4   : > { %v722_v5 = vpop.f32.mrf.mxu1 }
  0xd8   : > { %v1572_v18 = vpop.xlane.xlu2 %377 }
  0xd9   : > { %v1574_v19 = vpop.xlane.xlu1 %375 }
  0xda   : > { %v374_v21 = vpop.xlane.xlu0 %373 }
  0xdc   : > { %v725_v44 = vpop.f32.mrf.mxu1 }
  0xe0   : > { %v392_v31 = vpop.xlane.xlu2 %391 }
  0xe1   : > { %v390_v32 = vpop.xlane.xlu1 %389  ;;  %v405_v33 = vadd.f32 %v392_v31, %v368_v16 }
  0xe2   : > { %v388_v34 = vpop.xlane.xlu0 %387  ;;  %v404_v35 = vadd.f32 %v390_v32, %v366_v8 }
  0xe3   : > { %v403_v38 = vadd.f32 %v388_v34, %v364_v9  ;;  %v428_v41 = vmul.f32 %v1576_v25, %v405_v33  ;;  %v437_v9 = vmul.f32 %v1607_v53, %v1607_v53 }
  0xe4   : > { %v427_v42 = vmul.f32 %v1576_v25, %v404_v35  ;;  %v653_v35 = vpop.f32.mrf.mxu2 }
  0xe5   : > { %v426_v45 = vmul.f32 %v1576_v25, %v403_v38  ;;  %v444_v46 = vsub.f32 %v428_v41, %v436_v39  ;;  %v440_v39 = vmul.f32 %v1629_v62, %v1629_v62 }
  0xe6   : > { %v443_v47 = vsub.f32 %v427_v42, %v435_v40  ;;  %v441_v40 = vmul.f32 %v1632_v10, %v1632_v10 }
  0xe7   : > { %v442_v50 = vsub.f32 %v426_v45, %v434_v43  ;;  %v452_v51 = vmax.f32 %v444_v46, 0.0  ;;  %v721_v46 = vadd.f32 %v1586_v29, %v1584_v28 }
  0xe8   : > { %v451_v52 = vmax.f32 %v443_v47, 0.0  ;;  %v398_v56 = vpop.xlane.xlu2 %397  ;;  %v1659_v47 = vadd.f32 %v730_v36, %v653_v35 }
  0xe9   : > { %v450_v55 = vmax.f32 %v442_v50, 0.0  ;;  %v396_v57 = vpop.xlane.xlu1 %395  ;;  %v1609_v58 = vadd.f32 1e-05, %v452_v51  ;;  %v408_v60 = vadd.f32 %v398_v56, %v374_v21  ;;  %v723_v56 = vadd.f32 %v722_v5, %v645_v0 }
  0xea   : > { %v1611_v59 = vadd.f32 1e-05, %v451_v52  ;;  %v394_v61 = vpop.xlane.xlu0 %393  ;;  %v407_v63 = vadd.f32 %v396_v57, %v372_v13 }
  0xeb   : > { %v1617_v3 = vadd.f32 1e-05, %v450_v55  ;;  %v406_v4 = vadd.f32 %v394_v61, %v370_v14  ;;  %1131 = vrsqrt.f32 %v1609_v58  ;;  %v431_v7 = vmul.f32 %v1576_v25, %v408_v60 }
  0xec   : > { %v430_v8 = vmul.f32 %v1576_v25, %v407_v63  ;;  %vm482_vm1 = vweird.f32 %v1611_v59  ;;  %vm492_vm5 = vweird.f32 %v1609_v58 }
  0xed   : > { %1133 = vrsqrt.f32 %v1617_v3  ;;  %v429_v11 = vmul.f32 %v1576_v25, %v406_v4  ;;  %v447_v12 = vsub.f32 %v431_v7, %v439_v1  ;;  %vm472_vm2 = vweird.f32 %v1617_v3 }
  0xee   : > { %1135 = vrsqrt.f32 %v1611_v59  ;;  %v446_v13 = vsub.f32 %v430_v8, %v438_v2 }
  0xef   : > { %v445_v14 = vsub.f32 %v429_v11, %v437_v9  ;;  %v455_v15 = vmax.f32 %v447_v12, 0.0  ;;  %v1687_v12 = vld [vmem:[%s1819_s3] ss:$0 sm:$0xff] }
  0xf0   : > { %v454_v16 = vmax.f32 %v446_v13, 0.0 }
  0xf1   : > { %v453_v17 = vmax.f32 %v445_v14, 0.0  ;;  %v402_v20 = vpop.xlane.xlu1 %401  ;;  %v1634_v21 = vpop.eup %1131  ;;  %v1636_v22 = vadd.f32 1e-05, %v455_v15 }
  0xf2   : > { %v1638_v23 = vadd.f32 1e-05, %v454_v16  ;;  %v400_v24 = vpop.xlane.xlu0 %399  ;;  %v410_v31 = vadd.f32 %v402_v20, %v1572_v18  ;;  %v487_v33 = vmul.f32 %v1634_v21, %v1609_v58  ;;  %vm493_vm6 = vweird.f32 %v1634_v21  ;;  %v655_v14 = vpop.f32.mrf.mxu2 }
  0xf3   : > { %v1134_v32 = vpop.eup %1133  ;;  %v1643_v34 = vadd.f32 1e-05, %v453_v17  ;;  %v409_v37 = vadd.f32 %v400_v24, %v1574_v19  ;;  %1137 = vrsqrt.f32 %v1636_v22  ;;  %v648_v19 = vpop.f32.mrf.mxu0  ;;  %v1701_v24 = vld [vmem:[%s1820_s4] ss:$0 sm:$0xff]  ;;  %vm522_vm10 = vweird.f32 %v1636_v22  ;;  %vm494_vm11 = vmor %vm492_vm5, %vm493_vm6 }
  0xf4   : > { %v1136_v38 = vpop.eup %1135  ;;  %v467_v41 = vmul.f32 %v1134_v32, %v1617_v3  ;;  %v433_v43 = vmul.f32 %v1576_v25, %v410_v31  ;;  %v488_v54 = vmul.f32 %v1634_v21, %v487_v33  ;;  %vm473_vm3 = vweird.f32 %v1134_v32  ;;  %v732_v15 = vpop.f32.mrf.mxu3 }
  0xf5   : > { %v477_v18 = vmul.f32 %v1136_v38, %v1611_v59  ;;  %1139 = vrsqrt.f32 %v1643_v34  ;;  %v432_v42 = vmul.f32 %v1576_v25, %v409_v37  ;;  %v726_v25 = vadd.f32 %v725_v44, %v648_v19  ;;  %vm474_vm7 = vmor %vm472_vm2, %vm473_vm3 }
  0xf6   : > { %1141 = vrsqrt.f32 %v1638_v23  ;;  %v468_v45 = vmul.f32 %v1134_v32, %v467_v41  ;;  %v449_v51 = vsub.f32 %v433_v43, %v441_v40  ;;  %v489_v63 = vmul.f32 0.5, %v488_v54 }
  0xf7   : > { %v448_v50 = vsub.f32 %v432_v42, %v440_v39  ;;  %v478_v52 = vmul.f32 %v1136_v38, %v477_v18  ;;  %vm483_vm4 = vweird.f32 %v1136_v38  ;;  %vm512_vm8 = vweird.f32 %v1638_v23 }
  0xf8   : > { %v469_v55 = vmul.f32 0.5, %v468_v45  ;;  %v457_v60 = vmax.f32 %v449_v51, 0.0  ;;  %v490_v8 = vsub.f32 1.5, %v489_v63  ;;  %vm484_vm9 = vmor %vm482_vm1, %vm483_vm4  ;;  %vm502_vm1 = vweird.f32 %v1643_v34 }
  0xf9   : > { %v456_v57 = vmax.f32 %v448_v50, 0.0  ;;  %v479_v61 = vmul.f32 0.5, %v478_v52  ;;  %v1663_v1 = vpop.eup %1137 }
  0xfa   : > { %v470_v2 = vsub.f32 1.5, %v469_v55  ;;  %v517_v29 = vmul.f32 %v1663_v1, %v1636_v22  ;;  %v1672_v0 = vadd.f32 1e-05, %v457_v60  ;;  %v491_v17 = vmul.f32 %v1634_v21, %v490_v8  ;;  %v727_v60 = vpop.f32.mrf.mxu1 }
  0xfb   : > { %v1666_v28 = vpop.eup %1139  ;;  %v1670_v4 = vadd.f32 1e-05, %v456_v57  ;;  %v480_v5 = vsub.f32 1.5, %v479_v61  ;;  %vm523_vm12 = vweird.f32 %v1663_v1  ;;  %v733_v61 = vadd.f32 %v732_v15, %v655_v14 }
  0xfc   : > { %v1674_v6 = vpop.eup %1141  ;;  %v471_v7 = vmul.f32 %v1134_v32, %v470_v2  ;;  %v497_v9 = vmul.f32 %v1666_v28, %v1643_v34  ;;  %v518_v3 = vmul.f32 %v1663_v1, %v517_v29  ;;  %vm524_vm14 = vmor %vm522_vm10, %vm523_vm12  ;;  %v658_v2 = vpop.f32.mrf.mxu2  ;;  %vm503_vm0 = vweird.f32 %v1666_v28 }
  0xfd   : > { %v507_v11 = vmul.f32 %v1674_v6, %v1638_v23  ;;  %1143 = vrsqrt.f32 %v1670_v4  ;;  %v481_v13 = vmul.f32 %v1136_v38, %v480_v5  ;;  %vm513_vm13 = vweird.f32 %v1674_v6  ;;  %v735_v29 = vpop.f32.mrf.mxu3  ;;  %vm504_vm4 = vmor %vm502_vm1, %vm503_vm0 }
  0xfe   : > { %v475_v16 = vsel %vm474_vm7, %v1134_v32, %v471_v7  ;;  %1145 = vrsqrt.f32 %v1672_v0  ;;  %v519_v33 = vmul.f32 0.5, %v518_v3  ;;  %v498_v40 = vmul.f32 %v1666_v28, %v497_v9  ;;  %vm514_vm15 = vmor %vm512_vm8, %vm513_vm13 }
  0xff   : > { %v749_v20 = vmul.f32 %v475_v16, %v1589_v30  ;;  %v508_v31 = vmul.f32 %v1674_v6, %v507_v11  ;;  %v485_v32 = vsel %vm484_vm9, %v1136_v38, %v481_v13  ;;  %v495_v30 = vsel %vm494_vm11, %v1634_v21, %v491_v17 }
 0x100   : > { %v750_v59 = vmul.f32 %v485_v32, %v1582_v27  ;;  %v751_v37 = vmul.f32 %v495_v30, %v1579_v26  ;;  %v740_v38 = vmul.f32 %v721_v46, %v475_v16  ;;  %v520_v58 = vsub.f32 1.5, %v519_v33 }
 0x101   : > { %v761_v35 = vmul.f32 %v1687_v12, %v749_v20  ;;  %v509_v36 = vmul.f32 0.5, %v508_v31  ;;  %v741_v42 = vmul.f32 %v723_v56, %v485_v32  ;;  %v742_v45 = vmul.f32 %v726_v25, %v495_v30  ;;  %v650_v25 = vpop.f32.mrf.mxu0 }
 0x102   : > { %v762_v39 = vmul.f32 %v1687_v12, %v750_v59  ;;  %v763_v21 = vmul.f32 %v1687_v12, %v751_v37  ;;  %v521_v44 = vmul.f32 %v1663_v1, %v520_v58  ;;  %v499_v57 = vmul.f32 0.5, %v498_v40 }
 0x103   : > { %v1144_v27 = vpop.eup %1143  ;;  %v772_v41 = vsub.f32 %v1701_v24, %v761_v35  ;;  %v510_v18 = vsub.f32 1.5, %v509_v36  ;;  %v728_v9 = vadd.f32 %v727_v60, %v650_v25  ;;  %vm532_vm3 = vweird.f32 %v1670_v4 }
 0x104   : > { %v1720_v43 = vpop.eup %1145  ;;  %v527_v19 = vmul.f32 %v1144_v27, %v1670_v4  ;;  %v773_v26 = vsub.f32 %v1701_v24, %v762_v39  ;;  %v774_v52 = vsub.f32 %v1701_v24, %v763_v21  ;;  %v525_v55 = vsel %vm524_vm14, %v1663_v1, %v521_v44  ;;  %v660_v37 = vpop.f32.mrf.mxu2 }
 0x105   : > { %v780_v46 = vadd.f32 %v772_v41, %v740_v38  ;;  %v511_v50 = vmul.f32 %v1674_v6, %v510_v18  ;;  %v537_v51 = vmul.f32 %v1720_v43, %v1672_v0  ;;  %v754_v23 = vmul.f32 %v525_v55, %v1601_v48  ;;  %v737_v38 = vpop.f32.mrf.mxu3 }
 0x106   : > { %v781_v54 = vadd.f32 %v773_v26, %v741_v42  ;;  %v528_v56 = vmul.f32 %v1144_v27, %v527_v19  ;;  %v782_v63 = vadd.f32 %v774_v52, %v742_v45  ;;  %v500_v7 = vsub.f32 1.5, %v499_v57 }
 0x107   : > { %788 = vst [vmem:[%s1740_s24] sm:$0xff] %v780_v46  ;;  %v515_v22 = vsel %vm514_vm15, %v1674_v6, %v511_v50  ;;  %v766_v8 = vmul.f32 %v1687_v12, %v754_v23  ;;  %v538_v6 = vmul.f32 %v1720_v43, %v537_v51  ;;  %vm533_vm2 = vweird.f32 %v1144_v27 }
 0x108   : > { %v753_v1 = vmul.f32 %v515_v22, %v1604_v49  ;;  %789 = vst [vmem:[%s1740_s24 + $0x8] sm:$0xff] %v781_v54  ;;  %v529_v5 = vmul.f32 0.5, %v528_v56  ;;  %v501_v13 = vmul.f32 %v1666_v28, %v500_v7  ;;  %v745_v49 = vmul.f32 %v733_v61, %v525_v55  ;;  %vm534_vm5 = vmor %vm532_vm3, %vm533_vm2 }
 0x109   : > { %790 = vst [vmem:[%s1740_s24 + $0x10] sm:$0xff] %v782_v63  ;;  %v777_v14 = vsub.f32 %v1701_v24, %v766_v8  ;;  %v539_v15 = vmul.f32 0.5, %v538_v6  ;;  %v744_v34 = vmul.f32 %v1659_v47, %v515_v22  ;;  %vm543_vm6 = vweird.f32 %v1720_v43 }
 0x10a   : > { %v765_v48 = vmul.f32 %v1687_v12, %v753_v1  ;;  %v530_v11 = vsub.f32 1.5, %v529_v5  ;;  %v505_v17 = vsel %vm504_vm4, %v1666_v28, %v501_v13  ;;  %vm542_vm7 = vweird.f32 %v1672_v0 }
 0x10b   : > { %v785_v20 = vadd.f32 %v777_v14, %v745_v49  ;;  %v752_v31 = vmul.f32 %v505_v17, %v1607_v53  ;;  %v540_v32 = vsub.f32 1.5, %v539_v15  ;;  %v736_v28 = vadd.f32 %v735_v29, %v658_v2  ;;  %vm544_vm8 = vmor %vm542_vm7, %vm543_vm6 }
 0x10c   : > { %v776_v16 = vsub.f32 %v1701_v24, %v765_v48  ;;  %v531_v3 = vmul.f32 %v1144_v27, %v530_v11  ;;  %v743_v35 = vmul.f32 %v728_v9, %v505_v17 }
 0x10d   : > { %793 = vst [vmem:[%s1740_s24 + $0x28] sm:$0xff] %v785_v20  ;;  %v764_v47 = vmul.f32 %v1687_v12, %v752_v31  ;;  %v541_v30 = vmul.f32 %v1720_v43, %v540_v32 }
 0x10e   : > { %v784_v59 = vadd.f32 %v776_v16, %v744_v34  ;;  %v535_v33 = vsel %vm534_vm5, %v1144_v27, %v531_v3  ;;  %v738_v27 = vadd.f32 %v737_v38, %v660_v37 }
 0x10f   : > { %v755_v4 = vmul.f32 %v535_v33, %v1629_v62  ;;  %v775_v36 = vsub.f32 %v1701_v24, %v764_v47  ;;  %v545_v62 = vsel %vm544_vm8, %v1720_v43, %v541_v30  ;;  %v746_v39 = vmul.f32 %v736_v28, %v535_v33 }
 0x110   : > { %792 = vst [vmem:[%s1740_s24 + $0x20] sm:$0xff] %v784_v59  ;;  %v756_v0 = vmul.f32 %v545_v62, %v1632_v10  ;;  %v747_v42 = vmul.f32 %v738_v27, %v545_v62 }
 0x111   : > { %v767_v53 = vmul.f32 %v1687_v12, %v755_v4  ;;  %v783_v40 = vadd.f32 %v775_v36, %v743_v35 }
 0x112   : > { %v768_v41 = vmul.f32 %v1687_v12, %v756_v0 }
 0x113   : > { %v778_v58 = vsub.f32 %v1701_v24, %v767_v53  ;;  %791 = vst [vmem:[%s1740_s24 + $0x18] sm:$0xff] %v783_v40 }
 0x114   : > { %v779_v21 = vsub.f32 %v1701_v24, %v768_v41 }
 0x115   : > { %v786_v18 = vadd.f32 %v778_v58, %v746_v39 }
 0x116   : > { %v787_v10 = vadd.f32 %v779_v21, %v747_v42 }
 0x117   : > { %794 = vst [vmem:[%s1740_s24 + $0x30] sm:$0xff] %v786_v18 }
 0x118   : > { %795 = vst [vmem:[%s1740_s24 + $0x38] sm:$0xff] %v787_v10 }
 0x119   : > { %1264 = shalt.err (!%p1261_p0)
}
 0x11a   : > { %s1332_s25 = smov 128   ;;  %s1333_s26 = smov 8  }
 0x11b   : > { %1047 = dma.vmem_to_hbm [thread:$0]  (%p1447_p7), %s812_s14, 1024, %s814_s15, %s797_s16, %s1332_s25, %s1332_s25, %s1333_s26  }
 0x11c PF: > { %s828_s28 = sand.u32 1, %s1303_s18   ;;  %p1061_p3 = pnand %p925_p11, %p1413_p6 }
 0x11d   : > { %s829_s8 = scalar_lea.sflag [#allocation4], %s828_s28 }
 0x11e   : > { %p1062_p5 = pneg %p1061_p3 }
 0x120   : > { %1298 = dma.done.wait (%p1062_p5), %s829_s8, 1024  }
 0x121   : > { %1300 = vsyncadd (%p1062_p5), %s829_s8, 4294966272  ;;  %s22_s23 = sadd.s32 1, %s1323_s23   ;;  %s1835_s6 = sld [smem:[#allocation12_spill]] }
 0x122   : > { %p19_p9 = scmp.ge.s32.totalorder %s22_s23, 4   ;;  %s1836_s18 = smov %s1307_s19 }
 0x123   : > { %s1837_s19 = smov %s1311_s20  ;;  %s1838_s20 = smov %s1456_s12 }
 0x124   : > { %s1839_s21 = smov %s1319_s22  ;;  %21 = sbr.rel (!%p19_p9) target bundleno = 10 (0xa), region = 93 }
 0x127   : > { %s1840_s22 = smov %s1835_s6 }
 0x129   :  { %835 = vsyncpa [#allocation3], 1 }
 0x12a   :  { %837 = vsyncpa [#allocation3 + $0x1], 1 }
 0x12b   :  { %838 = vsyncpa [#allocation6], 1 }
 0x12c   :  { %839 = vsyncpa [#allocation4], 1 }
 0x12d   :  { %841 = vsyncpa [#allocation4 + $0x1], 1 }

</bundles_post_ra>
